<compile_context>
chip_gen: v7x
topology: tpu7x:2x2x1
jax: 0.10.0
libtpu: 0.0.40
codegen_flags: <defaults>
</compile_context>

<pallas_src>
import jax
import jax.numpy as jnp
from jax.experimental import pallas as pl
from jax.experimental.pallas import tpu as pltpu


def _convt_relu_kernel(x_ref, w_ref, b_ref, o_ref):
    # x_ref: (Cin, TP)   w_ref: (CKK, Cin)   b_ref: (CKK, 1)   o_ref: (CKK, TP)
    acc = jnp.dot(w_ref[...], x_ref[...], preferred_element_type=jnp.float32)
    acc = acc + b_ref[...]                      # bias varies along sublanes, broadcast over lanes
    o_ref[...] = jnp.maximum(acc, 0.0).astype(o_ref.dtype)


def conv_transpose_block(x, weight, bias, *, kernel_size=2, stride=2, tp=1024):
    """ConvTranspose2d(kernel_size == stride, no padding) followed by ReLU.

    Args:
      x:      (B, Cin, H, W)      float32, NCHW (PyTorch layout)
      weight: (Cin, Cout, K, K)   float32 (PyTorch ConvTranspose2d layout)
      bias:   (Cout,)             float32
    Returns:
      (B, Cout, H*stride, W*stride) float32, NCHW
    """
    assert kernel_size == stride, "specialized to non-overlapping kernel_size == stride"
    B, Cin, H, W = x.shape
    Cin_w, Cout, K, K2 = weight.shape
    assert Cin_w == Cin and K == kernel_size and K2 == kernel_size

    HW = H * W
    CKK = Cout * K * K

    # Layout prep: only free / tiny ops (no full-tensor HBM passes over x).
    x_pix = x.reshape(B, Cin, HW)                                   # zero-copy view of NCHW
    w_t = weight.reshape(Cin, CKK).T                                # (CKK, Cin), tiny
    b_col = jnp.broadcast_to(bias[:, None], (Cout, K * K)).reshape(CKK, 1)

    # Pixel tile = lane axis of both x and out blocks. Keep it a multiple of 128
    # (lane-dense) unless the whole pixel axis fits in a single block.
    if HW <= tp:
        tp = HW
    else:
        tp = max(128, (tp // 128) * 128)
    grid = (B, pl.cdiv(HW, tp))

    out_raw = pl.pallas_call(
        _convt_relu_kernel,
        out_shape=jax.ShapeDtypeStruct((B, CKK, HW), x.dtype),
        grid_spec=pltpu.PrefetchScalarGridSpec(
            num_scalar_prefetch=0,
            grid=grid,
            in_specs=[
                pl.BlockSpec((None, Cin, tp), lambda b, p: (b, 0, p)),   # x pixels
                pl.BlockSpec((CKK, Cin), lambda b, p: (0, 0)),           # weight (grid-invariant)
                pl.BlockSpec((CKK, 1), lambda b, p: (0, 0)),             # bias   (grid-invariant)
            ],
            out_specs=pl.BlockSpec((None, CKK, tp), lambda b, p: (b, 0, p)),
        ),
        compiler_params=pltpu.CompilerParams(
            dimension_semantics=("parallel", "parallel"),
            vmem_limit_bytes=32 * 1024 * 1024,
        ),
    )(x_pix, w_t, b_col)

    # (B, CKK, HW) -> (B, Cout, K, K, H, W) -> (B, Cout, H, K, W, K) -> (B, Cout, K*H, K*W).
    # TODO(synk): this single transpose is the inherent KxK spatial scatter of a transposed
    # conv into NCHW; it stays in XLA as pure layout (one pass over the output).
    out = out_raw.reshape(B, Cout, K, K, H, W)
    out = jnp.transpose(out, (0, 1, 4, 2, 5, 3)).reshape(B, Cout, H * K, W * K)
    return out


def _reference(x, weight, bias):
    # Pure-JAX reference of ConvTranspose2d(k == s) + ReLU for verification.
    B, Cin, H, W = x.shape
    _, Cout, K, _ = weight.shape
    y = jnp.einsum("bchw,cokl->bohkwl", x, weight)
    y = y.reshape(B, Cout, H * K, W * K) + bias[None, :, None, None]
    return jnp.maximum(y, 0.0)


if __name__ == "__main__":
    B, Cin, H, W = 2, 4, 16, 16
    Cout, K, S = 8, 2, 2

    key = jax.random.PRNGKey(0)
    kx, kw, kb = jax.random.split(key, 3)
    x = jax.random.normal(kx, (B, Cin, H, W), dtype=jnp.float32)
    # Deterministic "init" mimicking nn.ConvTranspose2d parameter shapes.
    bound = 1.0 / (Cin * K * K) ** 0.5
    weight = jax.random.uniform(kw, (Cin, Cout, K, K), jnp.float32, -bound, bound)
    bias = jax.random.uniform(kb, (Cout,), jnp.float32, -bound, bound)

    out = conv_transpose_block(x, weight, bias, kernel_size=K, stride=S)
    out = jax.block_until_ready(out)

    ref = _reference(x, weight, bias)
    assert out.shape == (B, Cout, H * S, W * S), out.shape
    assert jnp.allclose(out, ref, atol=1e-5, rtol=1e-5), "mismatch vs reference"
    print("KERNEL_OK")
</pallas_src>

<mosaic_0001>
module attributes {stable_mosaic.version = 11 : i64} {
  func.func @_convt_relu_kernel(%arg0: i32, %arg1: i32, %arg2: memref<1x4x256xf32, #tpu.memory_space<vmem>>, %arg3: memref<32x4xf32, #tpu.memory_space<vmem>>, %arg4: memref<32x1xf32, #tpu.memory_space<vmem>>, %arg5: memref<1x32x256xf32, #tpu.memory_space<vmem>>) attributes {dimension_semantics = [#tpu.dimension_semantics<parallel>, #tpu.dimension_semantics<parallel>], iteration_bounds = array<i64: 2, 1>, scalar_prefetch = 0 : i64, scratch_operands = 0 : i64, tpu.core_type = #tpu.core_type<tc>, window_params = [{transform_indices = @transform_0, window_bounds = array<i64: 1, 4, 256>}, {pipeline_mode = #tpu.pipeline_mode<synchronous>, transform_indices = @transform_1, window_bounds = array<i64: 32, 4>}, {pipeline_mode = #tpu.pipeline_mode<synchronous>, transform_indices = @transform_2, window_bounds = array<i64: 32, 1>}, {transform_indices = @transform_3, window_bounds = array<i64: 1, 32, 256>}]} {
    %c0 = arith.constant 0 : index
    %c0_0 = arith.constant 0 : index
    %0 = vector.load %arg3[%c0, %c0_0] : memref<32x4xf32, #tpu.memory_space<vmem>>, vector<32x4xf32>
    %c0_1 = arith.constant 0 : index
    %c0_2 = arith.constant 0 : index
    %c0_3 = arith.constant 0 : index
    %1 = vector.load %arg2[%c0_1, %c0_2, %c0_3] : memref<1x4x256xf32, #tpu.memory_space<vmem>>, vector<1x4x256xf32>
    %2 = vector.shape_cast %1 : vector<1x4x256xf32> to vector<4x256xf32>
    %cst = arith.constant dense<0.000000e+00> : vector<32x256xf32>
    %3 = tpu.matmul %0, %2, %cst {dimension_numbers = #tpu.dot_dimension_numbers<[1], [0], [0], [1], [0, 0, 1, 1], [], []>} : vector<32x4xf32>, vector<4x256xf32>, vector<32x256xf32> -> vector<32x256xf32>
    %c0_4 = arith.constant 0 : index
    %c0_5 = arith.constant 0 : index
    %4 = vector.load %arg4[%c0_4, %c0_5] : memref<32x1xf32, #tpu.memory_space<vmem>>, vector<32x1xf32>
    %5 = vector.broadcast %4 : vector<32x1xf32> to vector<32x256xf32>
    %6 = arith.addf %3, %5 : vector<32x256xf32>
    %cst_6 = arith.constant 0.000000e+00 : f32
    %7 = vector.broadcast %cst_6 : f32 to vector<32x256xf32>
    %8 = arith.maximumf %6, %7 : vector<32x256xf32>
    %c0_7 = arith.constant 0 : index
    %c0_8 = arith.constant 0 : index
    %c0_9 = arith.constant 0 : index
    %9 = vector.load %arg5[%c0_7, %c0_8, %c0_9] : memref<1x32x256xf32, #tpu.memory_space<vmem>>, vector<1x32x256xf32>
    %10 = vector.shape_cast %9 : vector<1x32x256xf32> to vector<32x256xf32>
    %11 = vector.shape_cast %8 : vector<32x256xf32> to vector<1x32x256xf32>
    tpu.vector_store %arg5[%c0_7, %c0_8, %c0_9], %11 {strides = array<i32>} : memref<1x32x256xf32, #tpu.memory_space<vmem>>, vector<1x32x256xf32>,
    return
  }
  func.func @transform_0(%arg0: i32, %arg1: i32) -> (i32, i32, i32) {
    %c0_i32 = arith.constant 0 : i32
    %c0_i32_0 = arith.constant 0 : i32
    return %arg0, %c0_i32, %arg1 : i32, i32, i32
  }
  func.func @transform_1(%arg0: i32, %arg1: i32) -> (i32, i32) {
    %c0_i32 = arith.constant 0 : i32
    %c0_i32_0 = arith.constant 0 : i32
    %c0_i32_1 = arith.constant 0 : i32
    return %c0_i32, %c0_i32_0 : i32, i32
  }
  func.func @transform_2(%arg0: i32, %arg1: i32) -> (i32, i32) {
    %c0_i32 = arith.constant 0 : i32
    %c0_i32_0 = arith.constant 0 : i32
    %c0_i32_1 = arith.constant 0 : i32
    return %c0_i32, %c0_i32_0 : i32, i32
  }
  func.func @transform_3(%arg0: i32, %arg1: i32) -> (i32, i32, i32) {
    %c0_i32 = arith.constant 0 : i32
    %c0_i32_0 = arith.constant 0 : i32
    return %arg0, %c0_i32, %arg1 : i32, i32, i32
  }
}

</mosaic_0001>

<bundles_post_ra>
// kernel: tpu_custom_call.1
= control target key start
LH: loop header
LB: loop body
LE: loop exit
PB: predicated region body
PF: predicated region fallthrough
CT: control target
= control target key end

     0   :  { %8 = vsyncpa [#allocation3], 0  ;;  %s782_s0 = inlined_call_operand.vmem [shape: f32[2,4,256], index: 0, kind: input, shape index: {}]   ;;  %s783_s1 = inlined_call_operand.vmem [shape: f32[32,4], index: 1, kind: input, shape index: {}]   ;;  %s784_s2 = inlined_call_operand.vmem [shape: f32[32,1], index: 2, kind: input, shape index: {}]   ;;  %s785_s3 = inlined_call_operand.hbm [shape: f32[2,32,256], index: 3, kind: output, shape index: {}]  }
   0x1   :  { %10 = vsyncpa [#allocation3 + $0x1], 0  ;;  %s639_s12 = smov 0   ;;  %s641_s13 = smov 0  }
   0x2   :  { %s643_s14 = smov 0   ;;  %s645_s15 = smov 0  }
   0x3   :  { %s647_s16 = smov 0   ;;  %s649_s17 = smov 0  }
   0x4 LB: > { %s449_s18 = sadd.s32 4294967295, %s612_s17   ;;  %s450_s19 = sadd.s32 4294967294, %s612_s17   ;;  %s612_s17 = sphi %s649_s17, %s16_s17   ;;  %s608_s16 = sphi %s647_s16, %s792_s16   ;;  %s604_s15 = sphi %s645_s15, %s791_s15   ;;  %s600_s14 = sphi %s643_s14, %s790_s14   ;;  %s596_s13 = sphi %s641_s13, %s789_s13   ;;  %s592_s12 = sphi %s639_s12, %s788_s12  }
   0x5   : > { %s28_s20 = sadd.s32 1, %s608_s16  ;;  %s107_s21 = sadd.s32 1, %s600_s14 }
   0x6   : > { %p30_p0 = scmp.ge.s32.totalorder %s28_s20, 2  ;;  %p117_p1 = scmp.ne.s32.totalorder %s600_s14, %s596_s13 }
   0x7   : > { %p118_p2 = scmp.eq.s32.totalorder %s449_s18, 1  ;;  %p123_p3 = scmp.ne.s32.totalorder %s596_s13, %s592_s12 }
   0x8   : > { %s794_s20 = smov (%p30_p0, %s28_s20), 0  ;;  %p124_p5 = scmp.eq.s32.totalorder %s450_s19, 1 }
   0x9   : > { %p679_p4 = por %p118_p2, %p117_p1  ;;  %s102_s23 = ssub.s32 %s608_s16, %s794_s20 }
   0xa   : > { %p453_p6 = scmp.ge.s32.totalorder %s612_s17, 1  ;;  %p105_p7 = scmp.eq.s32.totalorder %s102_s23, 0 }
   0xb   : > { %p686_p8 = por %p124_p5, %p123_p3  ;;  %p161_p9 = scmp.lt.s32.totalorder %s612_s17, 3 }
   0xc   : > { %s692_s25 = scalar_select %p105_p7, %s600_s14, %s107_s21  }
   0xd   : > { %p162_p10 = pnand %p453_p6, %p161_p9 }
   0xe   : > { %p190_p11 = scmp.lt.s32.totalorder (!%p162_p10), %s604_s15, 1  ;;  %v614_v0 = vmov (!%p162_p10), 0.0   ;;  %v207_v1 = vld [vmem:[%s784_s2 + $0x10] sm:$0xff] (!%p162_p10)  ;;  %v615_v2 = vmov (!%p162_p10), 0   ;;  %v205_v3 = vld [vmem:[%s784_s2] sm:$0xff] (!%p162_p10)  ;;  %v208_v4 = vld [vmem:[%s784_s2 + $0x18] sm:$0xff] (!%p162_p10) }
   0xf   : > { %165 = sbr.rel (%p162_p10) target bundleno = 267 (0x10b), region = 32  ;;  %313 = vmatprep.mubr.f32.mxu0 (!%p162_p10), %v614_v0  ;;  %325 = vmatprep.mubr.f32.mxu1 (!%p162_p10), %v614_v0  ;;  %v206_v5 = vld [vmem:[%s784_s2 + $0x8] sm:$0xff] (!%p162_p10)  ;;  %vm244_vm0 = vcmask (!%p162_p10), 1043456   ;;  %v200_v8 = vld [vmem:[%s783_s1] sm:$0xff] (!%p162_p10)  ;;  %vm231_vm1 = vcmask (!%p162_p10), 31744   ;;  %v202_v9 = vld [vmem:[%s783_s1 + $0x10] sm:$0xff] (!%p162_p10) }
  0x10   : > { %532 = vset.pattern.permute.xlu1 (!%p162_p10), %v615_v2  ;;  %531 = vset.pattern.permute.xlu0 (!%p162_p10), %v615_v2  ;;  %v201_v10 = vld [vmem:[%s783_s1 + $0x8] sm:$0xff] (!%p162_p10)  ;;  %v203_v11 = vld [vmem:[%s783_s1 + $0x18] sm:$0xff] (!%p162_p10)  ;;  %s186_s30 = sand.u32 (!%p162_p10), 1, %s596_s13   ;;  %s469_s5 = sshll.u32 (!%p162_p10), %s604_s15, 10 }
  0x11   : > { %221 = vperm.xlu1 (!%p162_p10), %532, %v207_v1   ;;  %211 = vperm.xlu0 (!%p162_p10), %531, %v205_v3   ;;  %s736_s10 = scalar_lea.sflag (!%p162_p10), [#allocation3], %s186_s30  ;;  %s616_s18 = smov (!%p162_p10), [#allocation2]  }
  0x12   : > { %s538_s19 = sshll.u32 (!%p162_p10), %s616_s18, 4  ;;  %s539_s19 = int_to_ptr.vmem [resolvable:$false] %s538_s19 }
  0x13   : > { %s540_s21 = scalar_lea.vmem (!%p162_p10), %s539_s19, 2048 }
  0x15   : > { %226 = vperm.xlu1 (!%p162_p10), %532, %v208_v4   ;;  %216 = vperm.xlu0 (!%p162_p10), %531, %v206_v5  }
  0x16   : > { %s191_s28 = scalar_select %p190_p11, %s604_s15, 1 }
  0x17   : > { %s730_s15 = scalar_lea.hbm %s785_s3, %s469_s5 }
  0x18   : > { %s468_s4 = sshll.u32 %s191_s28, 3 }
  0x19   : > { %s197_s11 = scalar_lea.vmem %s782_s0, %s468_s4  ;;  %s454_s4 = sshll.u32 %s186_s30, 6 }
  0x1a   : > { %v204_v6 = vld [vmem:[%s197_s11] sm:$0xff]  ;;  %s188_s6 = scalar_lea.vmem [#allocation2], %s454_s4 }
  0x1b   : > { %v230_v7 = vcombine.high %v204_v6, %v204_v6  ;;  %s370_s7 = sshll.u32 %s188_s6, 4  ;;  %s732_s7 = int_to_ptr.vmem [resolvable:$true] %s370_s7 }
  0x1c   : > { %s534_s11 = scalar_lea.vmem %s732_s7, 1024  ;;  %p541_p1 = scmp.lt.s32.totalorder %s732_s7, %s539_s19 }
  0x1d   : > { %457 = vmatprep.subr.msk.mxu0 %vm244_vm0, %v230_v7  ;;  %470 = vmatprep.subr.msk.mxu1 %vm244_vm0, %v230_v7  ;;  %p535_p12 = scmp.ne.s32.totalorder %s732_s7, %s534_s11  ;;  %p542_p2 = scmp.lt.s32.totalorder %s540_s21, %s534_s11 }
  0x1e   : > { %458 = vmatpush1.msk.msra.mxu0 %vm244_vm0, %v204_v6  ;;  %471 = vmatpush1.msk.msra.mxu1 %vm244_vm0, %v204_v6 }
  0x1f   : > { %459 = vmatmul.mubr.msk.f32.vlgmr.msra.gmra.mrb[0].mxu0 %vm231_vm1, %v200_v8  ;;  %461 = vmatmul.mubr.msk.f32.vlgmr.msra.gmra.mrb[0].mxu1 %vm231_vm1, %v202_v9  ;;  %p536_p13 = pnand %p535_p12, %p679_p4  ;;  %p543_p3 = por %p542_p2, %p541_p1 }
  0x20   : > { %319 = vmatprep.mubr.f32.mxu0 %v614_v0  ;;  %331 = vmatprep.mubr.f32.mxu1 %v614_v0 }
  0x21   : > { %p537_p0 = pneg %p536_p13 }
  0x23   : > { %460 = vmatmul.mubr.msk.f32.gmra.mrb[2].mxu0 %vm231_vm1, %v201_v10  ;;  %462 = vmatmul.mubr.msk.f32.gmra.mrb[2].mxu1 %vm231_vm1, %v203_v11  ;;  %p544_p5 = pnand %p543_p3, %p537_p0 }
  0x90   : > { %v222_v12 = vpop.permute.xlu1 %221  ;;  %v212_v13 = vpop.permute.xlu0 %211 }
  0x94   : > { %v227_v24 = vpop.permute.xlu1 %226  ;;  %v217_v25 = vpop.permute.xlu0 %216 }
  0xf2   : > { %v315_v14 = vpop.f32.mrb[0].mxu0  ;;  %v327_v15 = vpop.f32.mrb[0].mxu1 }
  0xf3   : > { %v316_v16 = vadd.f32 %v315_v14, %v212_v13  ;;  %v328_v17 = vadd.f32 %v327_v15, %v222_v12  ;;  %v317_v18 = vpop.f32.mrb[1].mxu0  ;;  %v329_v19 = vpop.f32.mrb[1].mxu1 }
  0xf4   : > { %v318_v20 = vadd.f32 %v317_v18, %v212_v13  ;;  %v330_v21 = vadd.f32 %v329_v19, %v222_v12 }
  0xf5   : > { %v338_v22 = vmax.f32 %v316_v16, 0.0  ;;  %v342_v23 = vmax.f32 %v328_v17, 0.0 }
  0xf6   : > { %v339_v26 = vmax.f32 %v318_v20, 0.0  ;;  %v343_v27 = vmax.f32 %v330_v21, 0.0  ;;  %v321_v28 = vpop.f32.mrb[2].mxu0  ;;  %v333_v29 = vpop.f32.mrb[2].mxu1 }
  0xf7   : > { %346 = vst [vmem:[%s188_s6] sm:$0xff] %v338_v22  ;;  %350 = vst [vmem:[%s188_s6 + $0x20] sm:$0xff] %v342_v23  ;;  %v322_v30 = vadd.f32 %v321_v28, %v217_v25  ;;  %v334_v31 = vadd.f32 %v333_v29, %v227_v24  ;;  %v323_v32 = vpop.f32.mrb[3].mxu0  ;;  %v335_v33 = vpop.f32.mrb[3].mxu1 }
  0xf8   : > { %347 = vst [vmem:[%s188_s6 + $0x8] sm:$0xff] %v339_v26  ;;  %351 = vst [vmem:[%s188_s6 + $0x28] sm:$0xff] %v343_v27  ;;  %v324_v34 = vadd.f32 %v323_v32, %v217_v25  ;;  %v336_v35 = vadd.f32 %v335_v33, %v227_v24 }
  0xf9   : > { %v340_v36 = vmax.f32 %v322_v30, 0.0  ;;  %v344_v37 = vmax.f32 %v334_v31, 0.0 }
  0xfa   : > { %v341_v38 = vmax.f32 %v324_v34, 0.0  ;;  %v345_v39 = vmax.f32 %v336_v35, 0.0 }
  0xfb   : > { %348 = vst [vmem:[%s188_s6 + $0x10] sm:$0xff] %v340_v36  ;;  %352 = vst [vmem:[%s188_s6 + $0x30] sm:$0xff] %v344_v37 }
  0xfc   : > { %349 = vst [vmem:[%s188_s6 + $0x18] sm:$0xff] %v341_v38  ;;  %353 = vst [vmem:[%s188_s6 + $0x38] sm:$0xff] %v345_v39 }
  0xfd   : > { %547 = shalt.err (!%p544_p5)
}
  0xfe   : > { %s548_s23 = scalar_lea.hbm %s730_s15, 1024  ;;  %s552_s28 = scalar_lea.hbm %s785_s3, 2048 }
  0xff   : > { %p549_p6 = scmp.ne.s32.totalorder %s730_s15, %s548_s23  ;;  %p553_p10 = scmp.lt.u32.totalorder %s730_s15, %s785_s3 }
 0x100   : > { %p554_p11 = scmp.lt.u32.totalorder %s552_s28, %s548_s23  ;;  %p556_p13 = scmp.lt.u32.totalorder %s548_s23, %s730_s15 }
 0x101   : > { %p550_p7 = pnand %p549_p6, %p679_p4 }
 0x102   : > { %p555_p12 = por %p554_p11, %p553_p10 }
 0x103   : > { %p551_p9 = pneg %p550_p7 }
 0x104   : > { %p557_p0 = por %p556_p13, %p555_p12 }
 0x106   : > { %p558_p1 = pnand %p557_p0, %p551_p9 }
 0x108   : > { %561 = shalt.err (!%p558_p1)
}
 0x109   : > { %s617_s4 = smov 256   ;;  %s618_s5 = smov 16  }
 0x10a   : > { %472 = dma.vmem_to_hbm [thread:$0]  (%p679_p4), %s732_s7, 1024, %s730_s15, %s736_s10, %s617_s4, %s617_s4, %s618_s5  }
 0x10b PF: > { %p478_p2 = scmp.ge.s32.totalorder %s612_s17, 2  ;;  %s385_s6 = sand.u32 1, %s592_s12  }
 0x10c   : > { %s386_s8 = scalar_lea.sflag [#allocation3], %s385_s6 }
 0x10d   : > { %p475_p3 = pnand %p478_p2, %p686_p8 }
 0x10f   : > { %587 = dma.done.wait (!%p475_p3), %s386_s8, 1024  }
 0x110   : > { %589 = vsyncadd (!%p475_p3), %s386_s8, 4294966272  ;;  %s16_s17 = sadd.s32 1, %s612_s17   ;;  %s788_s12 = smov %s596_s13 }
 0x111   : > { %p13_p5 = scmp.ge.s32.totalorder %s16_s17, 4   ;;  %s789_s13 = smov %s600_s14 }
 0x112   : > { %s790_s14 = smov %s692_s25  ;;  %s791_s15 = smov %s608_s16 }
 0x113   : > { %s792_s16 = smov %s794_s20  ;;  %15 = sbr.rel (!%p13_p5) target bundleno = 4 (0x4), region = 67 }
 0x11a   :  { %391 = vsyncpa [#allocation3], 1 }
 0x11b   :  { %393 = vsyncpa [#allocation3 + $0x1], 1 }

</bundles_post_ra>
